<compile_context>
chip_gen: v6e
topology: v6e:2x2x1
jax: 0.10.0
libtpu: 0.0.40
codegen_flags: <defaults>
</compile_context>

<pallas_src>
import math

import jax
import jax.numpy as jnp
from jax import lax
from jax.experimental import pallas as pl
from jax.experimental.pallas import tpu as pltpu

LANE = 128
BN_EPS = 1e-5  # PyTorch BatchNorm2d default


def _ceil_to(x, m):
    return ((x + m - 1) // m) * m


def _pad_to(a, target_shape):
    return jnp.pad(a, [(0, t - s) for t, s in zip(target_shape, a.shape)])


def _silu(y):
    # Identical formula in kernel and reference so numerics line up.
    return y * (1.0 / (1.0 + jnp.exp(-y)))


# ---------------------------------------------------------------------------
# Kernel 1: fused 1x1 conv (matmul) + folded-BN affine + SiLU
# ---------------------------------------------------------------------------
def _pw_conv_kernel(x_ref, w_ref, s_ref, b_ref, o_ref):
    acc = jnp.dot(x_ref[...], w_ref[...], preferred_element_type=jnp.float32)
    y = acc * s_ref[...].astype(jnp.float32) + b_ref[...].astype(jnp.float32)
    o_ref[...] = _silu(y).astype(o_ref.dtype)


def conv1x1_bn_silu(x, w, scale, bias, *, tile_m=256):
    """x: (M, Cin); w: (Cin, Cout); scale/bias: (Cout,).  Returns (M, Cout)."""
    M, Cin = x.shape
    Cout = w.shape[1]
    Kp = _ceil_to(Cin, LANE)
    Np = _ceil_to(Cout, LANE)
    Mp = _ceil_to(M, tile_m)

    xp = _pad_to(x, (Mp, Kp))
    wp = _pad_to(w, (Kp, Np))
    sp = _pad_to(scale.reshape(1, -1), (1, Np))
    bp = _pad_to(bias.reshape(1, -1), (1, Np))

    out = pl.pallas_call(
        _pw_conv_kernel,
        out_shape=jax.ShapeDtypeStruct((Mp, Np), x.dtype),
        grid=(Mp // tile_m,),
        in_specs=[
            pl.BlockSpec((tile_m, Kp), lambda i: (i, 0)),
            pl.BlockSpec((Kp, Np), lambda i: (0, 0)),
            pl.BlockSpec((1, Np), lambda i: (0, 0)),
            pl.BlockSpec((1, Np), lambda i: (0, 0)),
        ],
        out_specs=pl.BlockSpec((tile_m, Np), lambda i: (i, 0)),
        compiler_params=pltpu.CompilerParams(
            dimension_semantics=("parallel",)),
    )(xp, wp, sp, bp)
    return out[:M, :Cout]


# ---------------------------------------------------------------------------
# Kernel 2: fused 3x3 conv (padding=1) + folded-BN affine + SiLU (+ residual)
# ---------------------------------------------------------------------------
def _make_conv3x3_kernel(with_residual, H, W):
    def compute(x4, w, s, b):
        # x4: (1, H+2, W+2, Cin_p), w: (9, Cin_p, Cout_p)
        cin = x4.shape[-1]
        cout = w.shape[-1]
        acc = jnp.zeros((H * W, cout), jnp.float32)
        for dh in range(3):
            for dw in range(3):
                patch = x4[0, dh:dh + H, dw:dw + W, :].reshape(H * W, cin)
                acc = acc + jnp.dot(patch, w[3 * dh + dw],
                                    preferred_element_type=jnp.float32)
        y = _silu(acc * s.astype(jnp.float32) + b.astype(jnp.float32))
        return y.reshape(1, H, W, cout)

    if with_residual:
        def kernel(x_ref, w_ref, s_ref, b_ref, r_ref, o_ref):
            y = compute(x_ref[...], w_ref[...], s_ref[...], b_ref[...])
            o_ref[...] = (y + r_ref[...].astype(jnp.float32)).astype(o_ref.dtype)
    else:
        def kernel(x_ref, w_ref, s_ref, b_ref, o_ref):
            y = compute(x_ref[...], w_ref[...], s_ref[...], b_ref[...])
            o_ref[...] = y.astype(o_ref.dtype)
    return kernel


def conv3x3_bn_silu(x, w, scale, bias, residual=None):
    """x: (N,H,W,Cin); w: (9,Cin,Cout) with tap index 3*dh+dw; scale/bias: (Cout,);
    residual (optional): (N,H,W,Cout).  Returns (N,H,W,Cout)."""
    N, H, W, Cin = x.shape
    Cout = w.shape[-1]
    Cin_p = _ceil_to(Cin, LANE)
    Cout_p = _ceil_to(Cout, LANE)

    xp = jnp.pad(x, ((0, 0), (1, 1), (1, 1), (0, Cin_p - Cin)))
    wp = _pad_to(w, (9, Cin_p, Cout_p))
    sp = _pad_to(scale.reshape(1, -1), (1, Cout_p))
    bp = _pad_to(bias.reshape(1, -1), (1, Cout_p))

    in_specs = [
        pl.BlockSpec((1, H + 2, W + 2, Cin_p), lambda n: (n, 0, 0, 0)),
        pl.BlockSpec((9, Cin_p, Cout_p), lambda n: (0, 0, 0)),
        pl.BlockSpec((1, Cout_p), lambda n: (0, 0)),
        pl.BlockSpec((1, Cout_p), lambda n: (0, 0)),
    ]
    args = [xp, wp, sp, bp]
    if residual is not None:
        rp = _pad_to(residual, (N, H, W, Cout_p))
        in_specs.append(pl.BlockSpec((1, H, W, Cout_p), lambda n: (n, 0, 0, 0)))
        args.append(rp)

    out = pl.pallas_call(
        _make_conv3x3_kernel(residual is not None, H, W),
        out_shape=jax.ShapeDtypeStruct((N, H, W, Cout_p), x.dtype),
        grid=(N,),
        in_specs=in_specs,
        out_specs=pl.BlockSpec((1, H, W, Cout_p), lambda n: (n, 0, 0, 0)),
        compiler_params=pltpu.CompilerParams(
            dimension_semantics=("parallel",)),
    )(*args)
    return out[..., :Cout]


# ---------------------------------------------------------------------------
# CSPBlock forward (Pallas)
# ---------------------------------------------------------------------------
def _fold_bn(p):
    scale = p['gamma'] / jnp.sqrt(p['var'] + BN_EPS)
    bias = p['beta'] - p['mean'] * scale
    return scale, bias


def _w_1x1(p):
    # PyTorch OIHW (Cout, Cin, 1, 1) -> (Cin, Cout)
    return p['w'][:, :, 0, 0].T


def _w_3x3(p):
    # OIHW (Cout, Cin, 3, 3) -> (9, Cin, Cout), tap index = 3*dh + dw
    cout, cin = p['w'].shape[:2]
    return jnp.transpose(p['w'], (2, 3, 1, 0)).reshape(9, cin, cout)


def csp_block_pallas(x, params, shortcut=True):
    """x: (N, C, H, W) float32 (PyTorch NCHW).  Returns (N, out_channels, H, W)."""
    N, C, H, W = x.shape
    M = N * H * W
    x_flat = jnp.transpose(x, (0, 2, 3, 1)).reshape(M, C)

    s1, b1 = _fold_bn(params['conv1'])
    y1 = conv1x1_bn_silu(x_flat, _w_1x1(params['conv1']), s1, b1)
    s2, b2 = _fold_bn(params['conv2'])
    y2 = conv1x1_bn_silu(x_flat, _w_1x1(params['conv2']), s2, b2)

    hidden = y1.shape[-1]
    z = y1
    for bp in params['m']:
        # Bottleneck(hidden, hidden): shortcut active iff requested (in == out here).
        sa, ba = _fold_bn(bp['conv1'])
        t = conv1x1_bn_silu(z, _w_1x1(bp['conv1']), sa, ba)
        sb, bb = _fold_bn(bp['conv2'])
        res = z.reshape(N, H, W, hidden) if shortcut else None
        z = conv3x3_bn_silu(
            t.reshape(N, H, W, t.shape[-1]), _w_3x3(bp['conv2']), sb, bb,
            residual=res).reshape(M, hidden)

    cat = jnp.concatenate([z, y2], axis=-1)
    s3, b3 = _fold_bn(params['conv3'])
    out = conv1x1_bn_silu(cat, _w_1x1(params['conv3']), s3, b3)
    return jnp.transpose(out.reshape(N, H, W, out.shape[-1]), (0, 3, 1, 2))


# ---------------------------------------------------------------------------
# Pure-JAX reference (mirrors the PyTorch module, inference-mode BN)
# ---------------------------------------------------------------------------
def _ref_conv_bn_silu(x, p, padding):
    y = lax.conv_general_dilated(
        x, p['w'], window_strides=(1, 1), padding=padding,
        dimension_numbers=('NCHW', 'OIHW', 'NCHW'),
        precision=lax.Precision.HIGHEST)
    inv_std = 1.0 / jnp.sqrt(p['var'] + BN_EPS)
    y = (y - p['mean'][None, :, None, None]) \
        * (p['gamma'] * inv_std)[None, :, None, None] \
        + p['beta'][None, :, None, None]
    return _silu(y)


def csp_block_ref(x, params, shortcut=True):
    y1 = _ref_conv_bn_silu(x, params['conv1'], 'VALID')
    y2 = _ref_conv_bn_silu(x, params['conv2'], 'VALID')
    z = y1
    for bp in params['m']:
        t = _ref_conv_bn_silu(z, bp['conv1'], 'VALID')
        t = _ref_conv_bn_silu(t, bp['conv2'], [(1, 1), (1, 1)])
        z = z + t if shortcut else t
    cat = jnp.concatenate([z, y2], axis=1)
    return _ref_conv_bn_silu(cat, params['conv3'], 'VALID')


# ---------------------------------------------------------------------------
# Parameter initialization (PyTorch-style OIHW weights + BN stats)
# ---------------------------------------------------------------------------
def _init_conv_bn(key, cin, cout, k):
    kw, kg, kb, km, kv = jax.random.split(key, 5)
    fan_in = cin * k * k
    return {
        'w': jax.random.normal(kw, (cout, cin, k, k), jnp.float32) / math.sqrt(fan_in),
        'gamma': jax.random.uniform(kg, (cout,), jnp.float32, minval=0.5, maxval=1.5),
        'beta': 0.1 * jax.random.normal(kb, (cout,), jnp.float32),
        'mean': 0.1 * jax.random.normal(km, (cout,), jnp.float32),
        'var': jax.random.uniform(kv, (cout,), jnp.float32, minval=0.5, maxval=1.5),
    }


def init_csp_params(key, in_channels, out_channels, n=1):
    hidden = out_channels // 2
    keys = jax.random.split(key, 3 + 2 * n)
    params = {
        'conv1': _init_conv_bn(keys[0], in_channels, hidden, 1),
        'conv2': _init_conv_bn(keys[1], in_channels, hidden, 1),
        'conv3': _init_conv_bn(keys[2], 2 * hidden, out_channels, 1),
        'm': [],
    }
    for i in range(n):
        params['m'].append({
            'conv1': _init_conv_bn(keys[3 + 2 * i], hidden, hidden // 2, 1),
            'conv2': _init_conv_bn(keys[4 + 2 * i], hidden // 2, hidden, 3),
        })
    return params


# TODO(synk): BatchNorm running-statistics update (training mode) is not
# implemented; the forward uses inference-mode folded scale/bias like eval().

if __name__ == "__main__":
    key = jax.random.PRNGKey(0)
    kx, kp = jax.random.split(key)

    N, H, W = 2, 16, 16
    in_channels, out_channels, n_blocks = 32, 32, 1
    x = jax.random.normal(kx, (N, in_channels, H, W), dtype=jnp.float32)
    params = init_csp_params(kp, in_channels, out_channels, n=n_blocks)

    out = csp_block_pallas(x, params, shortcut=True)
    out = jax.block_until_ready(out)

    ref = csp_block_ref(x, params, shortcut=True)
    assert out.shape == ref.shape == (N, out_channels, H, W)
    max_err = float(jnp.max(jnp.abs(out - ref)))
    assert jnp.allclose(out, ref, atol=3e-3, rtol=3e-3), f"max abs err = {max_err}"

    print("KERNEL_OK")
</pallas_src>

<mosaic_0001>
module attributes {stable_mosaic.version = 11 : i64} {
  func.func @_pw_conv_kernel(%arg0: i32, %arg1: memref<256x128xf32, #tpu.memory_space<vmem>>, %arg2: memref<128x128xf32, #tpu.memory_space<vmem>>, %arg3: memref<1x128xf32, #tpu.memory_space<vmem>>, %arg4: memref<1x128xf32, #tpu.memory_space<vmem>>, %arg5: memref<256x128xf32, #tpu.memory_space<vmem>>) attributes {dimension_semantics = [#tpu.dimension_semantics<parallel>], iteration_bounds = array<i64: 2>, scalar_prefetch = 0 : i64, scratch_operands = 0 : i64, tpu.core_type = #tpu.core_type<tc>, window_params = [{transform_indices = @transform_0, window_bounds = array<i64: 256, 128>}, {pipeline_mode = #tpu.pipeline_mode<synchronous>, transform_indices = @transform_1, window_bounds = array<i64: 128, 128>}, {pipeline_mode = #tpu.pipeline_mode<synchronous>, transform_indices = @transform_2, window_bounds = array<i64: 1, 128>}, {pipeline_mode = #tpu.pipeline_mode<synchronous>, transform_indices = @transform_3, window_bounds = array<i64: 1, 128>}, {transform_indices = @transform_4, window_bounds = array<i64: 256, 128>}]} {
    %c0 = arith.constant 0 : index
    %c0_0 = arith.constant 0 : index
    %0 = vector.load %arg1[%c0, %c0_0] : memref<256x128xf32, #tpu.memory_space<vmem>>, vector<256x128xf32>
    %c0_1 = arith.constant 0 : index
    %c0_2 = arith.constant 0 : index
    %1 = vector.load %arg2[%c0_1, %c0_2] : memref<128x128xf32, #tpu.memory_space<vmem>>, vector<128x128xf32>
    %cst = arith.constant dense<0.000000e+00> : vector<256x128xf32>
    %2 = tpu.matmul %0, %1, %cst {dimension_numbers = #tpu.dot_dimension_numbers<[1], [0], [0], [1], [0, 0, 1, 1], [], []>} : vector<256x128xf32>, vector<128x128xf32>, vector<256x128xf32> -> vector<256x128xf32>
    %c0_3 = arith.constant 0 : index
    %c0_4 = arith.constant 0 : index
    %3 = vector.load %arg3[%c0_3, %c0_4] : memref<1x128xf32, #tpu.memory_space<vmem>>, vector<1x128xf32>
    %4 = vector.broadcast %3 : vector<1x128xf32> to vector<256x128xf32>
    %5 = arith.mulf %2, %4 : vector<256x128xf32>
    %c0_5 = arith.constant 0 : index
    %c0_6 = arith.constant 0 : index
    %6 = vector.load %arg4[%c0_5, %c0_6] : memref<1x128xf32, #tpu.memory_space<vmem>>, vector<1x128xf32>
    %7 = vector.broadcast %6 : vector<1x128xf32> to vector<256x128xf32>
    %8 = arith.addf %5, %7 : vector<256x128xf32>
    %cst_7 = arith.constant 0.000000e+00 : f32
    %9 = vector.broadcast %cst_7 : f32 to vector<256x128xf32>
    %10 = arith.subf %9, %8 : vector<256x128xf32>
    %11 = math.exp %10 : vector<256x128xf32>
    %cst_8 = arith.constant 1.000000e+00 : f32
    %12 = vector.broadcast %cst_8 : f32 to vector<256x128xf32>
    %13 = arith.addf %12, %11 : vector<256x128xf32>
    %cst_9 = arith.constant 1.000000e+00 : f32
    %14 = vector.broadcast %cst_9 : f32 to vector<256x128xf32>
    %15 = arith.divf %14, %13 : vector<256x128xf32>
    %16 = arith.mulf %8, %15 : vector<256x128xf32>
    %c0_10 = arith.constant 0 : index
    %c0_11 = arith.constant 0 : index
    %17 = vector.load %arg5[%c0_10, %c0_11] : memref<256x128xf32, #tpu.memory_space<vmem>>, vector<256x128xf32>
    tpu.vector_store %arg5[%c0_10, %c0_11], %16 {strides = array<i32>} : memref<256x128xf32, #tpu.memory_space<vmem>>, vector<256x128xf32>,
    return
  }
  func.func @transform_0(%arg0: i32) -> (i32, i32) {
    %c0_i32 = arith.constant 0 : i32
    %c0_i32_0 = arith.constant 0 : i32
    return %arg0, %c0_i32 : i32, i32
  }
  func.func @transform_1(%arg0: i32) -> (i32, i32) {
    %c0_i32 = arith.constant 0 : i32
    %c0_i32_0 = arith.constant 0 : i32
    %c0_i32_1 = arith.constant 0 : i32
    return %c0_i32, %c0_i32_0 : i32, i32
  }
  func.func @transform_2(%arg0: i32) -> (i32, i32) {
    %c0_i32 = arith.constant 0 : i32
    %c0_i32_0 = arith.constant 0 : i32
    %c0_i32_1 = arith.constant 0 : i32
    return %c0_i32, %c0_i32_0 : i32, i32
  }
  func.func @transform_3(%arg0: i32) -> (i32, i32) {
    %c0_i32 = arith.constant 0 : i32
    %c0_i32_0 = arith.constant 0 : i32
    %c0_i32_1 = arith.constant 0 : i32
    return %c0_i32, %c0_i32_0 : i32, i32
  }
  func.func @transform_4(%arg0: i32) -> (i32, i32) {
    %c0_i32 = arith.constant 0 : i32
    %c0_i32_0 = arith.constant 0 : i32
    return %arg0, %c0_i32 : i32, i32
  }
}

</mosaic_0001>

<bundles_post_ra>
// kernel: tpu_custom_call.1
= control target key start
LH: loop header
LB: loop body
LE: loop exit
PB: predicated region body
PF: predicated region fallthrough
CT: control target
= control target key end

     0   :  { %9 = vsyncpa [#allocation3], 0  ;;  %s1920_s0 = inlined_call_operand.hbm [shape: f32[512,128], index: 0, kind: input, shape index: {}]   ;;  %s1921_s1 = inlined_call_operand.hbm [shape: f32[128,128], index: 1, kind: input, shape index: {}]   ;;  %s1922_s2 = inlined_call_operand.vmem [shape: f32[1,128], index: 2, kind: input, shape index: {}]   ;;  %s1923_s3 = inlined_call_operand.vmem [shape: f32[1,128], index: 3, kind: input, shape index: {}]   ;;  %s1924_s4 = inlined_call_operand.hbm [shape: f32[512,128], index: 4, kind: output, shape index: {}]  }
   0x1   :  { %11 = vsyncpa [#allocation3 + $0x1], 0 }
   0x2   :  { %12 = vsyncpa [#allocation6], 0 }
   0x3   :  { %13 = vsyncpa [#allocation4], 0 }
   0x4   :  { %15 = vsyncpa [#allocation4 + $0x1], 0  ;;  %s1462_s15 = smov 0   ;;  %s1464_s16 = smov 0  }
   0x5   :  { %s1466_s17 = smov 0   ;;  %s1468_s18 = smov 0  }
   0x6 LB: > { %s1483_s19 = sadd.s32 4294967295, %s1428_s18   ;;  %s937_s20 = sadd.s32 4294967294, %s1428_s18   ;;  %s1428_s18 = sphi %s1468_s18, %s1946_s18   ;;  %s1424_s17 = sphi %s1466_s17, %s1945_s17   ;;  %s1420_s16 = sphi %s1464_s16, %s1944_s16   ;;  %s1416_s15 = sphi %s1462_s15, %s1943_s15  }
   0x7   : > { %p41_p0 = scmp.ne.s32.totalorder %s1420_s16, %s1416_s15  ;;  %p1925_p1 = scmp.eq.s32.totalorder %s1483_s19, 0 }
   0x8   : > { %p134_p3 = scmp.eq.s32.totalorder %s937_s20, 1  ;;  %p938_p5 = scmp.ge.s32.totalorder %s1428_s18, 1 }
   0x9   : > { %p1492_p4 = por %p1925_p1, %p41_p0  ;;  %p141_p7 = scmp.lt.s32.totalorder %s1428_s18, 3 }
   0xa   : > { %p1497_p6 = por %p134_p3, %p41_p0  ;;  %s1430_s24 = smov [#allocation5]  }
   0xb   : > { %s1929_s21 = scalar_select %p1492_p4, 1, 0 }
   0xc   : > { %s1930_s22 = scalar_select %p1497_p6, 1, 0 }
   0xd   : > { %p1502_p8 = pnand %p938_p5, %p141_p7  ;;  %s153_s25 = sshll.u32 %s1430_s24, 4  ;;  %s154_s25 = int_to_ptr.vmem [resolvable:$true] %s153_s25 }
   0xe   : > { %s1516_s27 = sadd.s32 1, %s1428_s18   ;;  %s28_s28 = sadd.s32 1, %s1424_s17 }
   0xf   : > { %s1931_s23 = scalar_select %p1502_p8, 1, 0 }
  0x10   : > { %p1125_p9 = pneg %p1502_p8  ;;  %s25_s29 = ssub.s32 %s1428_s18, %s1516_s27 }
  0x11   : > { %s1317_s30 = scalar_lea.vmem %s154_s25, 2048  ;;  %p1325_p5 = scmp.lt.s32.totalorder %s154_s25, %s154_s25 }
  0x12   : > { %p1511_p11 = pnand %p1125_p9, %p1925_p1  ;;  %p1318_p13 = scmp.ne.s32.totalorder %s154_s25, %s1317_s30 }
  0x13   : > { %p1326_p7 = scmp.lt.s32.totalorder %s1317_s30, %s1317_s30 }
  0x14   : > { %p1308_p12 = pneg %p1511_p11 }
  0x15   : > { %p1327_p10 = por %p1326_p7, %p1325_p5 }
  0x16   : > { %p1320_p0 = pnand %p1318_p13, %p1308_p12 }
  0x18   : > { %p1321_p3 = pneg %p1320_p0 }
  0x1a   : > { %p1328_p2 = pnand %p1327_p10, %p1321_p3 }
  0x1c   : > { %1331 = shalt.err (!%p1328_p2)
}
  0x1d   : > { %s1431_s5 = smov 128   ;;  %s1432_s6 = smov 8  }
  0x1e   : > { %1128 = dma.hbm_to_vmem [thread:$0]  (!%p1511_p11), %s1921_s1, 2048, %s154_s25, [#allocation6], %s1431_s5, %s1431_s5, %s1432_s6  }
  0x1f   : > { %p26_p2 = scmp.eq.s32.totalorder %s25_s29, 0  ;;  %p35_p9 = scmp.ne.s32.totalorder %s1424_s17, %s1420_s16 }
  0x20   : > { %p36_p10 = scmp.eq.s32.totalorder %s1428_s18, 0  ;;  %p1138_p12 = scmp.lt.s32.totalorder %s1428_s18, 2 }
  0x21   : > { %s1536_s9 = scalar_select %p26_p2, %s1424_s17, %s28_s28  }
  0x22   : > { %p37_p13 = por %p36_p10, %p35_p9  ;;  %p1933_p0 = scmp.eq.s32.totalorder %s1483_s19, 1 }
  0x23   : > { %s173_s11 = sand.u32 1, %s1424_s17   ;;  %s955_s12 = sshll.u32 %s1428_s18, 12 }
  0x24   : > { %p1540_p3 = por %p1933_p0, %p35_p9  ;;  %s941_s13 = sshll.u32 %s173_s11, 8 }
  0x25   : > { %s1549_s24 = scalar_lea.hbm %s1920_s0, %s955_s12  ;;  %s177_s25 = scalar_lea.vmem [#allocation2], %s941_s13 }
  0x26   : > { %s1934_s10 = scalar_select %p1540_p3, 1, 0 }
  0x27   : > { %s184_s26 = sshll.u32 %s177_s25, 4  ;;  %p1551_p11 = pnand %p1138_p12, %p37_p13  ;;  %s1555_s26 = int_to_ptr.vmem [resolvable:$true] %s184_s26 }
  0x28   : > { %s1557_s29 = scalar_lea.sflag [#allocation3], %s173_s11  ;;  %s1332_s30 = scalar_lea.hbm %s1549_s24, 4096 }
  0x29   : > { %p1333_p5 = scmp.ne.s32.totalorder %s1549_s24, %s1332_s30  ;;  %p1334_p7 = pneg %p1551_p11 }
  0x2a   : > { %s1337_s12 = scalar_lea.hbm %s1920_s0, 8192  ;;  %p1338_p10 = scmp.lt.s32.totalorder %s1549_s24, %s1920_s0 }
  0x2b   : > { %p1335_p2 = pnand %p1334_p7, %p1333_p5  ;;  %p1339_p12 = scmp.lt.s32.totalorder %s1337_s12, %s1332_s30 }
  0x2d   : > { %p1336_p9 = pneg %p1335_p2  ;;  %p1340_p13 = por %p1339_p12, %p1338_p10 }
  0x2f   : > { %p1341_p0 = pnand %p1340_p13, %p1336_p9 }
  0x31   : > { %1344 = shalt.err (!%p1341_p0)
}
  0x32   : > { %s1345_s11 = scalar_lea.vmem %s1555_s26, 4096  ;;  %s1433_s20 = smov [#allocation2]  }
  0x33   : > { %p1346_p1 = scmp.ne.s32.totalorder %s1555_s26, %s1345_s11  ;;  %s1350_s25 = sshll.u32 %s1433_s20, 4  ;;  %s1351_s25 = int_to_ptr.vmem [resolvable:$false] %s1350_s25 }
  0x34   : > { %s1352_s7 = scalar_lea.vmem %s1351_s25, 8192  ;;  %p1353_p2 = scmp.lt.s32.totalorder %s1555_s26, %s1351_s25 }
  0x35   : > { %p1348_p6 = pnand %p1346_p1, %p1334_p7  ;;  %p1354_p3 = scmp.lt.s32.totalorder %s1352_s7, %s1345_s11 }
  0x37   : > { %p1349_p5 = pneg %p1348_p6  ;;  %p1355_p4 = por %p1354_p3, %p1353_p2 }
  0x39   : > { %p1356_p8 = pnand %p1355_p4, %p1349_p5 }
  0x3b   : > { %1359 = shalt.err (!%p1356_p8)
}
  0x3c   : > { %1132 = dma.hbm_to_vmem [thread:$0]  (!%p1551_p11), %s1549_s24, 4096, %s1555_s26, %s1557_s29, %s1431_s5, %s1431_s5, %s1432_s6  }
  0x3d   : > { %p1936_p1 = scmp.ne.s32.totalorder %s1931_s23, 0 }
  0x3e   : > { %s1584_s30 = sand.u32 (!%p1936_p1), 1, %s1420_s16   ;;  %p1937_p4 = scmp.ne.s32.totalorder (!%p1936_p1), %s1929_s21, 0 }
  0x3f   : > { %196 = sbr.rel (%p1936_p1) target bundleno = 413 (0x19d), region = 36  ;;  %s945_s8 = sshll.u32 (!%p1936_p1), %s1584_s30, 8 }
  0x40   : > { %s199_s12 = scalar_lea.sflag (!%p1936_p1), [#allocation3], %s1584_s30  ;;  %s1590_s28 = scalar_lea.vmem (!%p1936_p1), [#allocation2], %s945_s8 }
  0x44   : > { %1403 = dma.done.wait (%p1937_p4), %s199_s12, 4096  }
  0x45   : > { %1405 = vsyncadd (%p1937_p4), %s199_s12, 4294963200  ;;  %p1938_p6 = scmp.eq.s32.totalorder %s1483_s19, 0 }
  0x47   : > { %1407 = dma.done.wait (%p1938_p6), [#allocation6], 2048   ;;  %p1939_p8 = pmov %p1938_p6 }
  0x48   : > { %v280_v0 = vld [vmem:[#allocation5 + $0x78] sm:$0xff]  ;;  %v279_v1 = vld [vmem:[#allocation5 + $0x70] sm:$0xff]  ;;  %v278_v2 = vld [vmem:[#allocation5 + $0x68] sm:$0xff]  ;;  %s1775_s24 = scalar_lea.vmem [#allocation7], %s945_s8  ;;  %s956_s26 = sshll.u32 %s1483_s19, 12 }
  0x49   : > { %1409 = vsyncadd (%p1939_p8), [#allocation6], 4294965248  ;;  %1005 = vmatprep.subr.mxu0 %v280_v0  ;;  %1085 = vmatprep.subr.mxu1 %v280_v0  ;;  %v277_v3 = vld [vmem:[#allocation5 + $0x60] sm:$0xff]  ;;  %v276_v4 = vld [vmem:[#allocation5 + $0x58] sm:$0xff]  ;;  %s854_s29 = sshll.u32 %s1775_s24, 4  ;;  %s1872_s11 = scalar_lea.hbm %s1924_s4, %s956_s26  ;;  %s1874_s29 = int_to_ptr.vmem [resolvable:$true] %s854_s29 }
  0x4a   : > { %1006 = vmatpush3.msra.mxu0 %v280_v0  ;;  %1101 = vmatpush3.msra.mxu1 %v280_v0  ;;  %v275_v5 = vld [vmem:[#allocation5 + $0x50] sm:$0xff]  ;;  %v274_v6 = vld [vmem:[#allocation5 + $0x48] sm:$0xff]  ;;  %v273_v7 = vld [vmem:[#allocation5 + $0x40] sm:$0xff]  ;;  %s841_s19 = scalar_lea.sflag [#allocation4], %s1584_s30  ;;  %s1360_s20 = scalar_lea.vmem %s1874_s29, 4096 }
  0x4b   : > { %1007 = vmatprep.subr.mxu0 %v279_v1  ;;  %1086 = vmatprep.subr.mxu1 %v279_v1  ;;  %v272_v8 = vld [vmem:[#allocation5 + $0x38] sm:$0xff]  ;;  %v271_v9 = vld [vmem:[#allocation5 + $0x30] sm:$0xff]  ;;  %v270_v10 = vld [vmem:[#allocation5 + $0x28] sm:$0xff]  ;;  %p1361_p3 = scmp.ne.s32.totalorder %s1874_s29, %s1360_s20  ;;  %p1940_p11 = scmp.ne.s32.totalorder %s1934_s10, 0 }
  0x4c   : > { %1008 = vmatpush3.msra.mxu0 %v279_v1  ;;  %1102 = vmatpush3.msra.mxu1 %v279_v1  ;;  %v269_v11 = vld [vmem:[#allocation5 + $0x20] sm:$0xff]  ;;  %v268_v12 = vld [vmem:[#allocation5 + $0x18] sm:$0xff]  ;;  %v267_v13 = vld [vmem:[#allocation5 + $0x10] sm:$0xff]  ;;  %s1434_s25 = smov [#allocation7]  }
  0x4d   : > { %1009 = vmatprep.subr.mxu0 %v278_v2  ;;  %1087 = vmatprep.subr.mxu1 %v278_v2  ;;  %v266_v14 = vld [vmem:[#allocation5 + $0x8] sm:$0xff]  ;;  %v265_v15 = vld [vmem:[#allocation5] sm:$0xff]  ;;  %v235_v20 = vld [vmem:[%s1590_s28 + $0x10] sm:$0xff]  ;;  %p1362_p7 = pnand %p1361_p3, %p1940_p11  ;;  %s1364_s7 = sshll.u32 %s1434_s25, 4  ;;  %s1365_s7 = int_to_ptr.vmem [resolvable:$false] %s1364_s7 }
  0x4e   : > { %1010 = vmatpush3.msra.mxu0 %v278_v2  ;;  %1103 = vmatpush3.msra.mxu1 %v278_v2  ;;  %v233_v16 = vld [vmem:[%s1590_s28] sm:$0xff]  ;;  %v234_v18 = vld [vmem:[%s1590_s28 + $0x8] sm:$0xff]  ;;  %v251_v21 = vld [vmem:[%s1590_s28 + $0x90] sm:$0xff]  ;;  %s1366_s8 = scalar_lea.vmem %s1365_s7, 8192  ;;  %p1367_p10 = scmp.lt.s32.totalorder %s1874_s29, %s1365_s7 }
  0x4f   : > { %1011 = vmatprep.subr.mxu0 %v277_v3  ;;  %1088 = vmatprep.subr.mxu1 %v277_v3  ;;  %v249_v17 = vld [vmem:[%s1590_s28 + $0x80] sm:$0xff]  ;;  %v250_v19 = vld [vmem:[%s1590_s28 + $0x88] sm:$0xff]  ;;  %v236_v22 = vld [vmem:[%s1590_s28 + $0x18] sm:$0xff]  ;;  %p1363_p9 = pneg %p1362_p7  ;;  %p1368_p12 = scmp.lt.s32.totalorder %s1366_s8, %s1360_s20 }
  0x50   : > { %1012 = vmatpush3.msra.mxu0 %v277_v3  ;;  %1104 = vmatpush3.msra.mxu1 %v277_v3  ;;  %v252_v23 = vld [vmem:[%s1590_s28 + $0x98] sm:$0xff]  ;;  %v237_v24 = vld [vmem:[%s1590_s28 + $0x20] sm:$0xff]  ;;  %v238_v26 = vld [vmem:[%s1590_s28 + $0x28] sm:$0xff] }
  0x51   : > { %1013 = vmatprep.subr.mxu0 %v276_v4  ;;  %1089 = vmatprep.subr.mxu1 %v276_v4  ;;  %v253_v25 = vld [vmem:[%s1590_s28 + $0xa0] sm:$0xff]  ;;  %v254_v27 = vld [vmem:[%s1590_s28 + $0xa8] sm:$0xff]  ;;  %v239_v28 = vld [vmem:[%s1590_s28 + $0x30] sm:$0xff]  ;;  %p1369_p13 = por %p1368_p12, %p1367_p10 }
  0x52   : > { %1014 = vmatpush3.msra.mxu0 %v276_v4  ;;  %1105 = vmatpush3.msra.mxu1 %v276_v4  ;;  %v255_v29 = vld [vmem:[%s1590_s28 + $0xb0] sm:$0xff]  ;;  %v240_v30 = vld [vmem:[%s1590_s28 + $0x38] sm:$0xff]  ;;  %v241_v32 = vld [vmem:[%s1590_s28 + $0x40] sm:$0xff] }
  0x53   : > { %1015 = vmatprep.subr.mxu0 %v275_v5  ;;  %1090 = vmatprep.subr.mxu1 %v275_v5  ;;  %v256_v31 = vld [vmem:[%s1590_s28 + $0xb8] sm:$0xff]  ;;  %v257_v33 = vld [vmem:[%s1590_s28 + $0xc0] sm:$0xff]  ;;  %v242_v34 = vld [vmem:[%s1590_s28 + $0x48] sm:$0xff]  ;;  %p1370_p0 = pnand %p1369_p13, %p1363_p9 }
  0x54   : > { %1016 = vmatpush3.msra.mxu0 %v275_v5  ;;  %1106 = vmatpush3.msra.mxu1 %v275_v5  ;;  %v258_v35 = vld [vmem:[%s1590_s28 + $0xc8] sm:$0xff]  ;;  %v243_v36 = vld [vmem:[%s1590_s28 + $0x50] sm:$0xff]  ;;  %v244_v38 = vld [vmem:[%s1590_s28 + $0x58] sm:$0xff] }
  0x55   : > { %1017 = vmatprep.subr.mxu0 %v274_v6  ;;  %1091 = vmatprep.subr.mxu1 %v274_v6  ;;  %v259_v37 = vld [vmem:[%s1590_s28 + $0xd0] sm:$0xff]  ;;  %v260_v39 = vld [vmem:[%s1590_s28 + $0xd8] sm:$0xff]  ;;  %v245_v40 = vld [vmem:[%s1590_s28 + $0x60] sm:$0xff] }
  0x56   : > { %1018 = vmatpush3.msra.mxu0 %v274_v6  ;;  %1107 = vmatpush3.msra.mxu1 %v274_v6  ;;  %v261_v41 = vld [vmem:[%s1590_s28 + $0xe0] sm:$0xff]  ;;  %v246_v42 = vld [vmem:[%s1590_s28 + $0x68] sm:$0xff]  ;;  %v247_v44 = vld [vmem:[%s1590_s28 + $0x70] sm:$0xff] }
  0x57   : > { %1019 = vmatprep.subr.mxu0 %v273_v7  ;;  %1092 = vmatprep.subr.mxu1 %v273_v7  ;;  %v262_v43 = vld [vmem:[%s1590_s28 + $0xe8] sm:$0xff]  ;;  %v263_v45 = vld [vmem:[%s1590_s28 + $0xf0] sm:$0xff]  ;;  %v248_v46 = vld [vmem:[%s1590_s28 + $0x78] sm:$0xff] }
  0x58   : > { %1020 = vmatpush3.msra.mxu0 %v273_v7  ;;  %1108 = vmatpush3.msra.mxu1 %v273_v7  ;;  %v264_v47 = vld [vmem:[%s1590_s28 + $0xf8] sm:$0xff]  ;;  %v1635_v48 = vld [vmem:[%s1922_s2] ss:$0 sm:$0xff] }
  0x59   : > { %1021 = vmatprep.subr.mxu0 %v272_v8  ;;  %1093 = vmatprep.subr.mxu1 %v272_v8  ;;  %v1640_v50 = vld [vmem:[%s1923_s3] ss:$0 sm:$0xff] }
  0x5a   : > { %1022 = vmatpush3.msra.mxu0 %v272_v8  ;;  %1109 = vmatpush3.msra.mxu1 %v272_v8 }
  0x5b   : > { %1023 = vmatprep.subr.mxu0 %v271_v9  ;;  %1094 = vmatprep.subr.mxu1 %v271_v9 }
  0x5c   : > { %1024 = vmatpush3.msra.mxu0 %v271_v9  ;;  %1110 = vmatpush3.msra.mxu1 %v271_v9 }
  0x5d   : > { %1025 = vmatprep.subr.mxu0 %v270_v10  ;;  %1095 = vmatprep.subr.mxu1 %v270_v10 }
  0x5e   : > { %1026 = vmatpush3.msra.mxu0 %v270_v10  ;;  %1111 = vmatpush3.msra.mxu1 %v270_v10 }
  0x5f   : > { %1027 = vmatprep.subr.mxu0 %v269_v11  ;;  %1096 = vmatprep.subr.mxu1 %v269_v11 }
  0x60   : > { %1028 = vmatpush3.msra.mxu0 %v269_v11  ;;  %1112 = vmatpush3.msra.mxu1 %v269_v11 }
  0x61   : > { %1029 = vmatprep.subr.mxu0 %v268_v12  ;;  %1097 = vmatprep.subr.mxu1 %v268_v12 }
  0x62   : > { %1030 = vmatpush3.msra.mxu0 %v268_v12  ;;  %1113 = vmatpush3.msra.mxu1 %v268_v12 }
  0x63   : > { %1031 = vmatprep.subr.mxu0 %v267_v13  ;;  %1098 = vmatprep.subr.mxu1 %v267_v13 }
  0x64   : > { %1032 = vmatpush3.msra.mxu0 %v267_v13  ;;  %1114 = vmatpush3.msra.mxu1 %v267_v13 }
  0x65   : > { %1033 = vmatprep.subr.mxu0 %v266_v14  ;;  %1099 = vmatprep.subr.mxu1 %v266_v14 }
  0x66   : > { %1034 = vmatpush3.msra.mxu0 %v266_v14  ;;  %1115 = vmatpush3.msra.mxu1 %v266_v14 }
  0x67   : > { %1035 = vmatprep.subr.mxu0 %v265_v15  ;;  %1100 = vmatprep.subr.mxu1 %v265_v15 }
  0x68   : > { %1036 = vmatpush3.msra.mxu0 %v265_v15  ;;  %1116 = vmatpush3.msra.mxu1 %v265_v15 }
  0x69   : > { %1037 = vmatprep.mubr.f32.mxu0 %v233_v16  ;;  %1061 = vmatprep.mubr.f32.mxu1 %v249_v17 }
  0x6a   : > { %1038 = vmatmul.mubr.f32.vlgmr.msra.gmra.mxu0 %v234_v18  ;;  %1062 = vmatmul.mubr.f32.vlgmr.msra.gmra.mxu1 %v250_v19 }
  0x6b   : > { %1040 = vmatprep.mubr.f32.mxu0 %v235_v20  ;;  %1064 = vmatprep.mubr.f32.mxu1 %v251_v21 }
  0x6e   : > { %1041 = vmatmul.mubr.f32.gmra.mxu0 %v236_v22  ;;  %1065 = vmatmul.mubr.f32.gmra.mxu1 %v252_v23 }
  0x6f   : > { %1043 = vmatprep.mubr.f32.mxu0 %v237_v24  ;;  %1067 = vmatprep.mubr.f32.mxu1 %v253_v25 }
  0x72   : > { %1044 = vmatmul.mubr.f32.gmra.mxu0 %v238_v26  ;;  %1068 = vmatmul.mubr.f32.gmra.mxu1 %v254_v27 }
  0x73   : > { %1046 = vmatprep.mubr.f32.mxu0 %v239_v28  ;;  %1070 = vmatprep.mubr.f32.mxu1 %v255_v29 }
  0x76   : > { %1047 = vmatmul.mubr.f32.gmra.mxu0 %v240_v30  ;;  %1071 = vmatmul.mubr.f32.gmra.mxu1 %v256_v31 }
  0x77   : > { %1049 = vmatprep.mubr.f32.mxu0 %v241_v32  ;;  %1073 = vmatprep.mubr.f32.mxu1 %v257_v33 }
  0x7a   : > { %1050 = vmatmul.mubr.f32.gmra.mxu0 %v242_v34  ;;  %1074 = vmatmul.mubr.f32.gmra.mxu1 %v258_v35 }
  0x7b   : > { %1052 = vmatprep.mubr.f32.mxu0 %v243_v36  ;;  %1076 = vmatprep.mubr.f32.mxu1 %v259_v37 }
  0x7e   : > { %1053 = vmatmul.mubr.f32.gmra.mxu0 %v244_v38  ;;  %1077 = vmatmul.mubr.f32.gmra.mxu1 %v260_v39 }
  0x7f   : > { %1055 = vmatprep.mubr.f32.mxu0 %v245_v40  ;;  %1079 = vmatprep.mubr.f32.mxu1 %v261_v41 }
  0x82   : > { %1056 = vmatmul.mubr.f32.gmra.mxu0 %v246_v42  ;;  %1080 = vmatmul.mubr.f32.gmra.mxu1 %v262_v43 }
  0x83   : > { %1058 = vmatprep.mubr.f32.mxu0 %v247_v44  ;;  %1082 = vmatprep.mubr.f32.mxu1 %v263_v45 }
  0x86   : > { %1059 = vmatmul.mubr.f32.gmra.mxu0 %v248_v46  ;;  %1083 = vmatmul.mubr.f32.gmra.mxu1 %v264_v47 }
 0x12a   : > { %v1039_v49 = vpop.f32.mrf.mxu0  ;;  %v1063_v51 = vpop.f32.mrf.mxu1 }
 0x12b   : > { %v514_v52 = vmul.f32 %v1039_v49, %v1635_v48  ;;  %v530_v53 = vmul.f32 %v1063_v51, %v1635_v48 }
 0x12c   : > { %v347_v54 = vpop.f32.mrf.mxu0  ;;  %v427_v55 = vpop.f32.mrf.mxu1 }
 0x12d   : > { %v1645_v56 = vadd.f32 %v1640_v50, %v514_v52  ;;  %v1648_v57 = vadd.f32 %v1640_v50, %v530_v53  ;;  %v513_v58 = vmul.f32 %v1635_v48, %v347_v54  ;;  %v529_v59 = vmul.f32 %v1635_v48, %v427_v55 }
 0x12e   : > { %v1042_v60 = vpop.f32.mrf.mxu0  ;;  %v1066_v61 = vpop.f32.mrf.mxu1 }
 0x12f   : > { %v585_v62 = vsub.f32 0.0, %v1645_v56  ;;  %v601_v63 = vsub.f32 0.0, %v1648_v57  ;;  %v1655_v0 = vadd.f32 %v1640_v50, %v513_v58  ;;  %v1658_v1 = vadd.f32 %v1640_v50, %v529_v59 }
 0x130   : > { %v516_v2 = vmul.f32 %v1042_v60, %v1635_v48  ;;  %v532_v3 = vmul.f32 %v1066_v61, %v1635_v48  ;;  %v357_v4 = vpop.f32.mrf.mxu0  ;;  %v437_v5 = vpop.f32.mrf.mxu1 }
 0x131   : > { %v618_v6 = vmul.f32 1.442695, %v585_v62  ;;  %v650_v7 = vmul.f32 1.442695, %v601_v63  ;;  %v584_v8 = vsub.f32 0.0, %v1655_v0  ;;  %v600_v9 = vsub.f32 0.0, %v1658_v1 }
 0x132   : > { %v1665_v10 = vadd.f32 %v1640_v50, %v516_v2  ;;  %v1668_v11 = vadd.f32 %v1640_v50, %v532_v3  ;;  %v515_v12 = vmul.f32 %v1635_v48, %v357_v4  ;;  %v531_v13 = vmul.f32 %v1635_v48, %v437_v5  ;;  %v1045_v14 = vpop.f32.mrf.mxu0  ;;  %v1069_v15 = vpop.f32.mrf.mxu1 }
 0x133   : > { %1178 = vpow2.f32 %v618_v6  ;;  %v616_v16 = vmul.f32 1.442695, %v584_v8  ;;  %v648_v17 = vmul.f32 1.442695, %v600_v9  ;;  %v518_v18 = vmul.f32 %v1045_v14, %v1635_v48 }
 0x134   : > { %1180 = vpow2.f32 %v650_v7  ;;  %v587_v19 = vsub.f32 0.0, %v1665_v10  ;;  %v603_v20 = vsub.f32 0.0, %v1668_v11  ;;  %v1676_v21 = vadd.f32 %v1640_v50, %v515_v12  ;;  %v367_v22 = vpop.f32.mrf.mxu0  ;;  %v447_v23 = vpop.f32.mrf.mxu1 }
 0x135   : > { %1182 = vpow2.f32 %v616_v16  ;;  %v1679_v24 = vadd.f32 %v1640_v50, %v531_v13  ;;  %v1682_v25 = vadd.f32 %v1640_v50, %v518_v18  ;;  %v534_v26 = vmul.f32 %v1069_v15, %v1635_v48 }
 0x136   : > { %1184 = vpow2.f32 %v648_v17  ;;  %v622_v27 = vmul.f32 1.442695, %v587_v19  ;;  %v654_v28 = vmul.f32 1.442695, %v603_v20  ;;  %v586_v29 = vsub.f32 0.0, %v1676_v21  ;;  %v1048_v30 = vpop.f32.mrf.mxu0  ;;  %v1072_v31 = vpop.f32.mrf.mxu1 }
 0x137   : > { %v602_v32 = vsub.f32 0.0, %v1679_v24  ;;  %v589_v33 = vsub.f32 0.0, %v1682_v25  ;;  %v1689_v34 = vadd.f32 %v1640_v50, %v534_v26  ;;  %v517_v35 = vmul.f32 %v1635_v48, %v367_v22 }
 0x138   : > { %1186 = vpow2.f32 %v622_v27  ;;  %v620_v36 = vmul.f32 1.442695, %v586_v29  ;;  %v533_v37 = vmul.f32 %v1635_v48, %v447_v23  ;;  %v520_v38 = vmul.f32 %v1048_v30, %v1635_v48  ;;  %v377_v39 = vpop.f32.mrf.mxu0  ;;  %v457_v40 = vpop.f32.mrf.mxu1 }
 0x139   : > { %1188 = vpow2.f32 %v654_v28  ;;  %v652_v41 = vmul.f32 1.442695, %v602_v32  ;;  %v626_v42 = vmul.f32 1.442695, %v589_v33  ;;  %v605_v43 = vsub.f32 0.0, %v1689_v34 }
 0x13a   : > { %1190 = vpow2.f32 %v620_v36  ;;  %v1696_v44 = vadd.f32 %v1640_v50, %v517_v35  ;;  %v1699_v45 = vadd.f32 %v1640_v50, %v533_v37  ;;  %v1702_v46 = vadd.f32 %v1640_v50, %v520_v38  ;;  %v1051_v47 = vpop.f32.mrf.mxu0  ;;  %v1075_v49 = vpop.f32.mrf.mxu1 }
 0x13b   : > { %1192 = vpow2.f32 %v652_v41  ;;  %v658_v51 = vmul.f32 1.442695, %v605_v43  ;;  %v536_v52 = vmul.f32 %v1072_v31, %v1635_v48  ;;  %v519_v53 = vmul.f32 %v1635_v48, %v377_v39 }
 0x13c   : > { %1194 = vpow2.f32 %v626_v42  ;;  %v588_v54 = vsub.f32 0.0, %v1696_v44  ;;  %v604_v55 = vsub.f32 0.0, %v1699_v45  ;;  %v591_v58 = vsub.f32 0.0, %v1702_v46  ;;  %v387_v62 = vpop.f32.mrf.mxu0  ;;  %v467_v5 = vpop.f32.mrf.mxu1 }
 0x13d   : > { %1196 = vpow2.f32 %v658_v51  ;;  %v1710_v59 = vadd.f32 %v1640_v50, %v536_v52  ;;  %v1713_v60 = vadd.f32 %v1640_v50, %v519_v53  ;;  %v535_v61 = vmul.f32 %v1635_v48, %v457_v40 }
 0x13e   : > { %v624_v63 = vmul.f32 1.442695, %v588_v54  ;;  %v656_v2 = vmul.f32 1.442695, %v604_v55  ;;  %v630_v3 = vmul.f32 1.442695, %v591_v58  ;;  %v522_v4 = vmul.f32 %v1051_v47, %v1635_v48  ;;  %v1054_v17 = vpop.f32.mrf.mxu0  ;;  %v1078_v22 = vpop.f32.mrf.mxu1 }
 0x13f   : > { %v607_v6 = vsub.f32 0.0, %v1710_v59  ;;  %v1719_v7 = vadd.f32 %v1640_v50, %v535_v61  ;;  %v590_v9 = vsub.f32 0.0, %v1713_v60  ;;  %v538_v12 = vmul.f32 %v1075_v49, %v1635_v48 }
 0x140   : > { %v1179_v8 = vpop.eup %1178  ;;  %1198 = vpow2.f32 %v624_v63  ;;  %v1724_v15 = vadd.f32 %v1640_v50, %v522_v4  ;;  %v521_v16 = vmul.f32 %v1635_v48, %v387_v62  ;;  %v537_v20 = vmul.f32 %v1635_v48, %v467_v5  ;;  %v397_v36 = vpop.f32.mrf.mxu0 }
 0x141   : > { %v1181_v13 = vpop.eup %1180  ;;  %v681_v14 = vadd.f32 1.0, %v1179_v8  ;;  %1200 = vpow2.f32 %v656_v2  ;;  %v662_v27 = vmul.f32 1.442695, %v607_v6  ;;  %v606_v28 = vsub.f32 0.0, %v1719_v7  ;;  %v477_v41 = vpop.f32.mrf.mxu1 }
 0x142   : > { %v1183_v18 = vpop.eup %1182  ;;  %v697_v19 = vadd.f32 1.0, %v1181_v13  ;;  %1202 = vpow2.f32 %v630_v3  ;;  %v1730_v30 = vadd.f32 %v1640_v50, %v538_v12  ;;  %v628_v32 = vmul.f32 1.442695, %v590_v9  ;;  %v1057_v63 = vpop.f32.mrf.mxu0 }
 0x143   : > { %v1185_v23 = vpop.eup %1184  ;;  %1204 = vrcp.f32 %v681_v14  ;;  %v680_v26 = vadd.f32 1.0, %v1183_v18  ;;  %v593_v33 = vsub.f32 0.0, %v1724_v15  ;;  %v1734_v35 = vadd.f32 %v1640_v50, %v521_v16  ;;  %v1081_v6 = vpop.f32.mrf.mxu1 }
 0x144   : > { %1206 = vrcp.f32 %v697_v19  ;;  %v696_v29 = vadd.f32 1.0, %v1185_v23  ;;  %v524_v39 = vmul.f32 %v1054_v17, %v1635_v48  ;;  %v540_v40 = vmul.f32 %v1078_v22, %v1635_v48  ;;  %v407_v22 = vpop.f32.mrf.mxu0 }
 0x145   : > { %v1187_v31 = vpop.eup %1186  ;;  %1208 = vrcp.f32 %v680_v26  ;;  %v660_v47 = vmul.f32 1.442695, %v606_v28  ;;  %v1739_v49 = vadd.f32 %v1640_v50, %v537_v20  ;;  %v609_v53 = vsub.f32 0.0, %v1730_v30 }
 0x146   : > { %v1189_v37 = vpop.eup %1188  ;;  %1210 = vrcp.f32 %v696_v29  ;;  %v683_v38 = vadd.f32 1.0, %v1187_v31  ;;  %v1743_v54 = vadd.f32 %v1640_v50, %v524_v39  ;;  %v592_v61 = vsub.f32 0.0, %v1734_v35 }
 0x147   : > { %v1191_v42 = vpop.eup %1190  ;;  %v699_v43 = vadd.f32 1.0, %v1189_v37  ;;  %1212 = vpow2.f32 %v662_v27  ;;  %v523_v62 = vmul.f32 %v1635_v48, %v397_v36  ;;  %v634_v4 = vmul.f32 1.442695, %v593_v33 }
 0x148   : > { %v1193_v51 = vpop.eup %1192  ;;  %1214 = vrcp.f32 %v683_v38  ;;  %v682_v52 = vadd.f32 1.0, %v1191_v42  ;;  %v1748_v5 = vadd.f32 %v1640_v50, %v540_v40  ;;  %v608_v9 = vsub.f32 0.0, %v1739_v49 }
 0x149   : > { %v1195_v55 = vpop.eup %1194  ;;  %1216 = vrcp.f32 %v699_v43  ;;  %v698_v58 = vadd.f32 1.0, %v1193_v51  ;;  %v595_v12 = vsub.f32 0.0, %v1743_v54  ;;  %v1753_v13 = vadd.f32 %v1640_v50, %v523_v62  ;;  %v1060_v51 = vpop.f32.mrf.mxu0 }
 0x14a   : > { %v1197_v2 = vpop.eup %1196  ;;  %1218 = vrcp.f32 %v682_v52  ;;  %v685_v3 = vadd.f32 1.0, %v1195_v55  ;;  %v539_v14 = vmul.f32 %v1635_v48, %v477_v41  ;;  %v526_v16 = vmul.f32 %v1057_v63, %v1635_v48 }
 0x14b   : > { %1220 = vrcp.f32 %v698_v58  ;;  %v701_v8 = vadd.f32 1.0, %v1197_v2  ;;  %v666_v18 = vmul.f32 1.442695, %v609_v53  ;;  %v632_v19 = vmul.f32 1.442695, %v592_v61 }
 0x14c   : > { %1222 = vrcp.f32 %v685_v3  ;;  %v542_v20 = vmul.f32 %v1081_v6, %v1635_v48  ;;  %v611_v27 = vsub.f32 0.0, %v1748_v5  ;;  %v1760_v28 = vadd.f32 %v1640_v50, %v539_v14 }
 0x14d   : > { %v1199_v17 = vpop.eup %1198  ;;  %1224 = vrcp.f32 %v701_v8  ;;  %v664_v33 = vmul.f32 1.442695, %v608_v9  ;;  %v1763_v36 = vadd.f32 %v1640_v50, %v526_v16  ;;  %v638_v39 = vmul.f32 1.442695, %v595_v12 }
 0x14e   : > { %v1201_v23 = vpop.eup %1200  ;;  %v684_v26 = vadd.f32 1.0, %v1199_v17  ;;  %1226 = vpow2.f32 %v628_v32  ;;  %v594_v40 = vsub.f32 0.0, %v1753_v13  ;;  %v487_v32 = vpop.f32.mrf.mxu1  ;;  %v1768_v43 = vadd.f32 %v1640_v50, %v542_v20 }
 0x14f   : > { %v1203_v29 = vpop.eup %1202  ;;  %v700_v31 = vadd.f32 1.0, %v1201_v23  ;;  %1228 = vpow2.f32 %v660_v47  ;;  %v525_v47 = vmul.f32 %v1635_v48, %v407_v22  ;;  %v670_v55 = vmul.f32 1.442695, %v611_v27 }
 0x150   : > { %v1205_v37 = vpop.eup %1204  ;;  %1230 = vrcp.f32 %v684_v26  ;;  %v687_v38 = vadd.f32 1.0, %v1203_v29  ;;  %v610_v58 = vsub.f32 0.0, %v1760_v28  ;;  %v597_v62 = vsub.f32 0.0, %v1763_v36  ;;  %v1084_v8 = vpop.f32.mrf.mxu1 }
 0x151   : > { %v1207_v41 = vpop.eup %1206  ;;  %v777_v42 = vmul.f32 %v1205_v37, %v1645_v56  ;;  %1232 = vrcp.f32 %v700_v31  ;;  %v541_v3 = vmul.f32 %v1635_v48, %v487_v32  ;;  %v528_v6 = vmul.f32 %v1060_v51, %v1635_v48  ;;  %v417_v32 = vpop.f32.mrf.mxu0 }
 0x152   : > { %v1209_v52 = vpop.eup %1208  ;;  %v793_v53 = vmul.f32 %v1207_v41, %v1648_v57  ;;  %1234 = vrcp.f32 %v687_v38  ;;  %v1781_v57 = vadd.f32 %v1640_v50, %v525_v47  ;;  %v613_v12 = vsub.f32 0.0, %v1768_v43  ;;  %v497_v51 = vpop.f32.mrf.mxu1 }
 0x153   : > { %v1211_v61 = vpop.eup %1210  ;;  %809 = vst [vmem:[%s1775_s24 + $0x8] sm:$0xff] %v777_v42  ;;  %v776_v56 = vmul.f32 %v1209_v52, %v1655_v0  ;;  %1236 = vpow2.f32 %v634_v4  ;;  %v636_v4 = vmul.f32 1.442695, %v594_v40  ;;  %v1795_v17 = vadd.f32 %v1640_v50, %v528_v6 }
 0x154   : > { %v1213_v63 = vpop.eup %1212  ;;  %825 = vst [vmem:[%s1775_s24 + $0x88] sm:$0xff] %v793_v53  ;;  %v792_v2 = vmul.f32 %v1211_v61, %v1658_v1  ;;  %1238 = vpow2.f32 %v666_v18  ;;  %v1792_v1 = vadd.f32 %v1640_v50, %v541_v3  ;;  %v544_v22 = vmul.f32 %v1084_v8, %v1635_v48 }
 0x155   : > { %v1215_v9 = vpop.eup %1214  ;;  %808 = vst [vmem:[%s1775_s24] sm:$0xff] %v776_v56  ;;  %v703_v0 = vadd.f32 1.0, %v1213_v63  ;;  %1240 = vpow2.f32 %v632_v19  ;;  %v668_v19 = vmul.f32 1.442695, %v610_v58  ;;  %v642_v26 = vmul.f32 1.442695, %v597_v62 }
 0x156   : > { %v1217_v14 = vpop.eup %1216  ;;  %824 = vst [vmem:[%s1775_s24 + $0x80] sm:$0xff] %v792_v2  ;;  %v779_v16 = vmul.f32 %v1215_v9, %v1665_v10  ;;  %1242 = vpow2.f32 %v664_v33  ;;  %v596_v27 = vsub.f32 0.0, %v1781_v57  ;;  %v612_v33 = vsub.f32 0.0, %v1792_v1 }
 0x157   : > { %v1219_v18 = vpop.eup %1218  ;;  %v795_v20 = vmul.f32 %v1217_v14, %v1668_v11  ;;  %1244 = vrcp.f32 %v703_v0  ;;  %v674_v11 = vmul.f32 1.442695, %v613_v12  ;;  %v527_v61 = vmul.f32 %v1635_v48, %v417_v32 }
 0x158   : > { %v1221_v23 = vpop.eup %1220  ;;  %811 = vst [vmem:[%s1775_s24 + $0x18] sm:$0xff] %v779_v16  ;;  %v778_v10 = vmul.f32 %v1219_v18, %v1676_v21  ;;  %1246 = vpow2.f32 %v638_v39  ;;  %v599_v21 = vsub.f32 0.0, %v1795_v17  ;;  %v640_v47 = vmul.f32 1.442695, %v596_v27 }
 0x159   : > { %v1223_v29 = vpop.eup %1222  ;;  %827 = vst [vmem:[%s1775_s24 + $0x98] sm:$0xff] %v795_v20  ;;  %v794_v31 = vmul.f32 %v1221_v23, %v1679_v24  ;;  %1248 = vpow2.f32 %v670_v55  ;;  %v1811_v24 = vadd.f32 %v1640_v50, %v544_v22  ;;  %v672_v53 = vmul.f32 1.442695, %v612_v33 }
 0x15a   : > { %v1225_v37 = vpop.eup %1224  ;;  %810 = vst [vmem:[%s1775_s24 + $0x10] sm:$0xff] %v778_v10  ;;  %v781_v38 = vmul.f32 %v1223_v29, %v1682_v25  ;;  %1250 = vpow2.f32 %v636_v4  ;;  %v646_v58 = vmul.f32 1.442695, %v599_v21  ;;  %v543_v2 = vmul.f32 %v1635_v48, %v497_v51 }
 0x15b   : > { %v1227_v39 = vpop.eup %1226  ;;  %826 = vst [vmem:[%s1775_s24 + $0x90] sm:$0xff] %v794_v31  ;;  %v797_v40 = vmul.f32 %v1225_v37, %v1689_v34  ;;  %1252 = vpow2.f32 %v668_v19  ;;  %v615_v63 = vsub.f32 0.0, %v1811_v24 }
 0x15c   : > { %v1229_v41 = vpop.eup %1228  ;;  %813 = vst [vmem:[%s1775_s24 + $0x28] sm:$0xff] %v781_v38  ;;  %v686_v42 = vadd.f32 1.0, %v1227_v39  ;;  %1254 = vpow2.f32 %v642_v26  ;;  %v1828_v14 = vadd.f32 %v1640_v50, %v543_v2 }
 0x15d   : > { %v1231_v25 = vpop.eup %1230  ;;  %829 = vst [vmem:[%s1775_s24 + $0xa8] sm:$0xff] %v797_v40  ;;  %v702_v52 = vadd.f32 1.0, %v1229_v41  ;;  %1256 = vpow2.f32 %v674_v11  ;;  %v678_v12 = vmul.f32 1.442695, %v615_v63 }
 0x15e   : > { %v1233_v55 = vpop.eup %1232  ;;  %v780_v34 = vmul.f32 %v1231_v25, %v1696_v44  ;;  %1258 = vrcp.f32 %v686_v42  ;;  %v614_v27 = vsub.f32 0.0, %v1828_v14 }
 0x15f   : > { %v1235_v56 = vpop.eup %1234  ;;  %v796_v62 = vmul.f32 %v1233_v55, %v1699_v45  ;;  %1260 = vrcp.f32 %v702_v52  ;;  %v1825_v45 = vadd.f32 %v1640_v50, %v527_v61 }
 0x160   : > { %v1237_v3 = vpop.eup %1236  ;;  %812 = vst [vmem:[%s1775_s24 + $0x20] sm:$0xff] %v780_v34  ;;  %v783_v6 = vmul.f32 %v1235_v56, %v1702_v46  ;;  %1262 = vpow2.f32 %v640_v47  ;;  %v676_v39 = vmul.f32 1.442695, %v614_v27 }
 0x161   : > { %v1239_v8 = vpop.eup %1238  ;;  %828 = vst [vmem:[%s1775_s24 + $0xa0] sm:$0xff] %v796_v62  ;;  %v689_v44 = vadd.f32 1.0, %v1237_v3  ;;  %1264 = vpow2.f32 %v672_v53  ;;  %v598_v23 = vsub.f32 0.0, %v1825_v45 }
 0x162   : > { %v1241_v9 = vpop.eup %1240  ;;  %815 = vst [vmem:[%s1775_s24 + $0x38] sm:$0xff] %v783_v6  ;;  %v705_v0 = vadd.f32 1.0, %v1239_v8  ;;  %1266 = vpow2.f32 %v646_v58 }
 0x163   : > { %v1243_v4 = vpop.eup %1242  ;;  %1268 = vrcp.f32 %v689_v44  ;;  %v688_v48 = vadd.f32 1.0, %v1241_v9  ;;  %v644_v37 = vmul.f32 1.442695, %v598_v23 }
 0x164   : > { %v1245_v46 = vpop.eup %1244  ;;  %1270 = vrcp.f32 %v705_v0  ;;  %v704_v16 = vadd.f32 1.0, %v1243_v4 }
 0x165   : > { %v1247_v18 = vpop.eup %1246  ;;  %v799_v20 = vmul.f32 %v1245_v46, %v1710_v59  ;;  %1272 = vrcp.f32 %v688_v48 }
 0x166   : > { %v1249_v19 = vpop.eup %1248  ;;  %1274 = vrcp.f32 %v704_v16  ;;  %v691_v22 = vadd.f32 1.0, %v1247_v18 }
 0x167   : > { %v1251_v10 = vpop.eup %1250  ;;  %831 = vst [vmem:[%s1775_s24 + $0xb8] sm:$0xff] %v799_v20  ;;  %v707_v26 = vadd.f32 1.0, %v1249_v19  ;;  %1276 = vpow2.f32 %v678_v12 }
 0x168   : > { %v1253_v50 = vpop.eup %1252  ;;  %1278 = vrcp.f32 %v691_v22  ;;  %v690_v29 = vadd.f32 1.0, %v1251_v10 }
 0x169   : > { %v1255_v31 = vpop.eup %1254  ;;  %1280 = vrcp.f32 %v707_v26  ;;  %v706_v11 = vadd.f32 1.0, %v1253_v50 }
 0x16a   : > { %v1257_v59 = vpop.eup %1256  ;;  %1282 = vrcp.f32 %v690_v29  ;;  %v693_v33 = vadd.f32 1.0, %v1255_v31 }
 0x16b   : > { %v1259_v38 = vpop.eup %1258  ;;  %1284 = vrcp.f32 %v706_v11  ;;  %v709_v21 = vadd.f32 1.0, %v1257_v59 }
 0x16c   : > { %v1261_v40 = vpop.eup %1260  ;;  %v782_v32 = vmul.f32 %v1259_v38, %v1713_v60  ;;  %1286 = vrcp.f32 %v693_v33 }
 0x16d   : > { %v1263_v41 = vpop.eup %1262  ;;  %v798_v42 = vmul.f32 %v1261_v40, %v1719_v7  ;;  %1288 = vrcp.f32 %v709_v21 }
 0x16e   : > { %v1265_v47 = vpop.eup %1264  ;;  %814 = vst [vmem:[%s1775_s24 + $0x30] sm:$0xff] %v782_v32  ;;  %v692_v51 = vadd.f32 1.0, %v1263_v41  ;;  %1290 = vpow2.f32 %v644_v37 }
 0x16f   : > { %v1267_v25 = vpop.eup %1266  ;;  %830 = vst [vmem:[%s1775_s24 + $0xb0] sm:$0xff] %v798_v42  ;;  %v708_v52 = vadd.f32 1.0, %v1265_v47  ;;  %1292 = vpow2.f32 %v676_v39 }
 0x170   : > { %v1269_v53 = vpop.eup %1268  ;;  %1294 = vrcp.f32 %v692_v51  ;;  %v695_v55 = vadd.f32 1.0, %v1267_v25 }
 0x171   : > { %v1271_v60 = vpop.eup %1270  ;;  %v785_v34 = vmul.f32 %v1269_v53, %v1724_v15  ;;  %1296 = vrcp.f32 %v708_v52 }
 0x172   : > { %v1273_v7 = vpop.eup %1272  ;;  %v801_v58 = vmul.f32 %v1271_v60, %v1730_v30  ;;  %1298 = vrcp.f32 %v695_v55 }
 0x173   : > { %v1275_v61 = vpop.eup %1274  ;;  %817 = vst [vmem:[%s1775_s24 + $0x48] sm:$0xff] %v785_v34  ;;  %v784_v56 = vmul.f32 %v1273_v7, %v1734_v35 }
 0x174   : > { %v1277_v62 = vpop.eup %1276  ;;  %833 = vst [vmem:[%s1775_s24 + $0xc8] sm:$0xff] %v801_v58  ;;  %v800_v63 = vmul.f32 %v1275_v61, %v1739_v49 }
 0x175   : > { %v1279_v2 = vpop.eup %1278  ;;  %816 = vst [vmem:[%s1775_s24 + $0x40] sm:$0xff] %v784_v56  ;;  %v711_v3 = vadd.f32 1.0, %v1277_v62 }
 0x176   : > { %v1281_v15 = vpop.eup %1280  ;;  %832 = vst [vmem:[%s1775_s24 + $0xc0] sm:$0xff] %v800_v63  ;;  %v787_v30 = vmul.f32 %v1279_v2, %v1743_v54 }
 0x177   : > { %v1283_v6 = vpop.eup %1282  ;;  %v803_v8 = vmul.f32 %v1281_v15, %v1748_v5  ;;  %1300 = vrcp.f32 %v711_v3 }
 0x178   : > { %v1285_v35 = vpop.eup %1284  ;;  %819 = vst [vmem:[%s1775_s24 + $0x58] sm:$0xff] %v787_v30  ;;  %v786_v44 = vmul.f32 %v1283_v6, %v1753_v13 }
 0x179   : > { %v1287_v49 = vpop.eup %1286  ;;  %835 = vst [vmem:[%s1775_s24 + $0xd8] sm:$0xff] %v803_v8  ;;  %v802_v9 = vmul.f32 %v1285_v35, %v1760_v28 }
 0x17a   : > { %v1289_v0 = vpop.eup %1288  ;;  %818 = vst [vmem:[%s1775_s24 + $0x50] sm:$0xff] %v786_v44  ;;  %v789_v4 = vmul.f32 %v1287_v49, %v1763_v36 }
 0x17b   : > { %v1291_v54 = vpop.eup %1290  ;;  %834 = vst [vmem:[%s1775_s24 + $0xd0] sm:$0xff] %v802_v9  ;;  %v805_v5 = vmul.f32 %v1289_v0, %v1768_v43 }
 0x17c   : > { %v1293_v48 = vpop.eup %1292  ;;  %821 = vst [vmem:[%s1775_s24 + $0x68] sm:$0xff] %v789_v4  ;;  %v694_v12 = vadd.f32 1.0, %v1291_v54 }
 0x17d   : > { %v1295_v13 = vpop.eup %1294  ;;  %837 = vst [vmem:[%s1775_s24 + $0xe8] sm:$0xff] %v805_v5  ;;  %v710_v28 = vadd.f32 1.0, %v1293_v48 }
 0x17e   : > { %v1297_v46 = vpop.eup %1296  ;;  %v788_v16 = vmul.f32 %v1295_v13, %v1781_v57  ;;  %1302 = vrcp.f32 %v694_v12 }
 0x17f   : > { %v1299_v36 = vpop.eup %1298  ;;  %v804_v18 = vmul.f32 %v1297_v46, %v1792_v1  ;;  %1304 = vrcp.f32 %v710_v28 }
 0x180   : > { %820 = vst [vmem:[%s1775_s24 + $0x60] sm:$0xff] %v788_v16  ;;  %v791_v43 = vmul.f32 %v1299_v36, %v1795_v17 }
 0x181   : > { %836 = vst [vmem:[%s1775_s24 + $0xe0] sm:$0xff] %v804_v18 }
 0x182   : > { %823 = vst [vmem:[%s1775_s24 + $0x78] sm:$0xff] %v791_v43 }
 0x184   : > { %v1301_v20 = vpop.eup %1300 }
 0x185   : > { %v807_v19 = vmul.f32 %v1301_v20, %v1811_v24 }
 0x187   : > { %839 = vst [vmem:[%s1775_s24 + $0xf8] sm:$0xff] %v807_v19 }
 0x18b   : > { %v1303_v57 = vpop.eup %1302 }
 0x18c   : > { %v1305_v22 = vpop.eup %1304  ;;  %v790_v1 = vmul.f32 %v1303_v57, %v1825_v45 }
 0x18d   : > { %v806_v17 = vmul.f32 %v1305_v22, %v1828_v14 }
 0x18e   : > { %822 = vst [vmem:[%s1775_s24 + $0x70] sm:$0xff] %v790_v1 }
 0x18f   : > { %838 = vst [vmem:[%s1775_s24 + $0xf0] sm:$0xff] %v806_v17 }
 0x190   : > { %1373 = shalt.err (!%p1370_p0)
}
 0x191   : > { %s1374_s12 = scalar_lea.hbm %s1872_s11, 4096  ;;  %s1378_s23 = scalar_lea.hbm %s1924_s4, 8192 }
 0x192   : > { %p1375_p5 = scmp.ne.s32.totalorder %s1872_s11, %s1374_s12  ;;  %p1379_p4 = scmp.lt.s32.totalorder %s1872_s11, %s1924_s4 }
 0x193   : > { %p1380_p6 = scmp.lt.s32.totalorder %s1378_s23, %s1374_s12 }
 0x194   : > { %p1376_p2 = pnand %p1375_p5, %p1940_p11 }
 0x195   : > { %p1381_p8 = por %p1380_p6, %p1379_p4 }
 0x196   : > { %p1377_p1 = pneg %p1376_p2 }
 0x198   : > { %p1382_p3 = pnand %p1381_p8, %p1377_p1 }
 0x19a   : > { %1385 = shalt.err (!%p1382_p3)
}
 0x19b   : > { %s1435_s24 = smov 128   ;;  %s1436_s26 = smov 8  }
 0x19c   : > { %1123 = dma.vmem_to_hbm [thread:$0]  (%p1940_p11), %s1874_s29, 4096, %s1872_s11, %s841_s19, %s1435_s24, %s1435_s24, %s1436_s26  }
 0x19d PF: > { %s869_s13 = sand.u32 1, %s1416_s15   ;;  %p1941_p7 = scmp.ne.s32.totalorder %s1930_s22, 0 }
 0x19e   : > { %p1942_p9 = scmp.ge.s32.totalorder %s1428_s18, 2  ;;  %s870_s14 = scalar_lea.sflag [#allocation4], %s869_s13 }
 0x1a0   : > { %p1134_p10 = pnand %p1942_p9, %p1941_p7 }
 0x1a2   : > { %p1135_p12 = pneg %p1134_p10 }
 0x1a4   : > { %1411 = dma.done.wait (%p1135_p12), %s870_s14, 4096  }
 0x1a5   : > { %1413 = vsyncadd (%p1135_p12), %s870_s14, 4294963200  ;;  %p18_p13 = scmp.ge.s32.totalorder %s1516_s27, 4   ;;  %s1943_s15 = smov %s1420_s16 }
 0x1a6   : > { %s1944_s16 = smov %s1424_s17  ;;  %s1945_s17 = smov %s1536_s9 }
 0x1a7   : > { %s1946_s18 = smov %s1516_s27  ;;  %20 = sbr.rel (!%p18_p13) target bundleno = 6 (0x6), region = 85 }
 0x1ac   :  { %875 = vsyncpa [#allocation3], 1 }
 0x1ad   :  { %877 = vsyncpa [#allocation3 + $0x1], 1 }
 0x1ae   :  { %878 = vsyncpa [#allocation6], 1 }
 0x1af   :  { %879 = vsyncpa [#allocation4], 1 }
 0x1b0   :  { %881 = vsyncpa [#allocation4 + $0x1], 1 }

</bundles_post_ra>
